<compile_context>
chip_gen: v6e
topology: v6e:2x2x1
jax: 0.10.0
libtpu: 0.0.40
codegen_flags: <defaults>
</compile_context>

<pallas_src>
import functools
import math

import jax
import jax.numpy as jnp
from jax.experimental import pallas as pl
from jax.experimental.pallas import tpu as pltpu

LANE = 128
SUBLANE = 8
MAX_BLOCK_ROWS = 4096   # (4096,128) f32 block = 2 MiB; 2 inputs x 2 buffers = 8 MiB VMEM
CHUNK_ROWS = 32         # rows per fori_loop step (4 f32 vregs per operand)


def _soft_focal_kernel(pred_ref, gt_ref, loss_ref, cnt_ref, *,
                       eps, n_inner, block_rows, chunk_rows,
                       total_rows, n_full_tiles, any_partial):
    o = pl.program_id(0)   # outer split axis (CORE_PARALLEL on v7x)
    i = pl.program_id(1)   # inner reduction axis ("arbitrary")

    @pl.when(i == 0)
    def _():
        loss_ref[...] = jnp.zeros_like(loss_ref)
        cnt_ref[...] = jnp.zeros_like(cnt_ref)

    n_chunks = block_rows // chunk_rows
    n_groups = chunk_rows // SUBLANE

    def compute_tile(row_limit):
        # row_limit: None  -> all rows valid, no mask code traced (hot path);
        #            else  -> scalar int32 number of valid rows in this tile
        #                     (<= 0 for a fully padded tile -> contributes 0).
        if row_limit is not None:
            row_iota = jax.lax.broadcasted_iota(jnp.int32, (chunk_rows, LANE), 0)

        def step(j, carry):
            l_acc, c_acc = carry
            r0 = pl.multiple_of(j * chunk_rows, chunk_rows)
            # Load native dtype (f32/bf16), upcast in-register; accumulate f32.
            pred = pred_ref[pl.ds(r0, chunk_rows), :].astype(jnp.float32)
            gt = gt_ref[pl.ds(r0, chunk_rows), :].astype(jnp.float32)

            # out = out.clamp_max(0.999).clamp_min(0.0001)
            pred = jnp.clip(pred, 0.0001, 0.999)

            maskb = (gt >= 0.0) & (gt <= 1.0)
            if row_limit is not None:
                maskb = maskb & (row_iota < (row_limit - j * chunk_rows))
            posb = (gt >= 1.0 - eps) & maskb          # neg = maskb & ~posb

            one_m_pred = 1.0 - pred
            pos_w = jnp.square(one_m_pred)                                # (1-p)^2
            neg_w = jnp.square(pred) * jnp.square(jnp.square(1.0 - gt))   # p^2 (1-gt)^4
            # Single log per element: pick its argument / weight per branch.
            log_arg = jnp.where(posb, pred, one_m_pred)
            weight = jnp.where(posb, pos_w, neg_w)
            elem = jnp.log(log_arg) * weight
            combined = jnp.where(maskb, elem, 0.0)    # shields OOB garbage / NaN
            cnt = jnp.where(posb, 1.0, 0.0)

            if n_groups > 1:   # fold (chunk_rows,128) -> (8,128): pure VPU adds
                combined = jnp.sum(combined.reshape(n_groups, SUBLANE, LANE), axis=0)
                cnt = jnp.sum(cnt.reshape(n_groups, SUBLANE, LANE), axis=0)
            return l_acc + combined, c_acc + cnt

        zeros = jnp.zeros((SUBLANE, LANE), jnp.float32)
        return jax.lax.fori_loop(0, n_chunks, step, (zeros, zeros),
                                 unroll=n_chunks <= 8)

    def accumulate(row_limit):
        l, c = compute_tile(row_limit)
        loss_ref[...] += l[None]   # one ref-add per tile
        cnt_ref[...] += c[None]

    if not any_partial:
        accumulate(None)           # hot path: zero masking overhead
    else:
        tile_idx = o * n_inner + i

        @pl.when(tile_idx < n_full_tiles)
        def _():
            accumulate(None)

        @pl.when(tile_idx >= n_full_tiles)
        def _():
            # Partial last tile, or the padded tile of an odd split
            # (row_limit <= 0 -> mask all false -> adds exactly zero).
            accumulate(total_rows - tile_idx * block_rows)


def _outer_semantics():
    """CORE_PARALLEL only on v7x (2 TensorCores/chip); PARALLEL elsewhere."""
    try:
        kind = jax.devices()[0].device_kind.lower()
    except Exception:
        return pltpu.PARALLEL
    if "v7" in kind or "tpu7" in kind:
        return pltpu.CORE_PARALLEL
    return pltpu.PARALLEL


def smooth_keypoint_focal_loss(out, target, eps=0.2):
    """JAX/Pallas equivalent of SmoothKeypointFocalLoss(eps).forward(out, target)."""
    assert out.shape == target.shape
    n = math.prod(out.shape)
    flat_pred = out.reshape(-1)
    flat_gt = target.reshape(-1)

    align = SUBLANE * LANE  # 1024
    if n % align != 0:
        # Rare fallback: pad < 1024 inert elements (gt = -1 fails the mask).
        # TODO(synk): this path materializes a copy; hot shapes should be 1024-aligned.
        pad = align - n % align
        flat_pred = jnp.concatenate(
            [flat_pred, jnp.full((pad,), 0.5, flat_pred.dtype)])
        flat_gt = jnp.concatenate(
            [flat_gt, jnp.full((pad,), -1.0, flat_gt.dtype)])

    total = flat_pred.shape[0]
    rows = total // LANE               # multiple of 8 by construction
    pred2 = flat_pred.reshape(rows, LANE)
    gt2 = flat_gt.reshape(rows, LANE)

    block_rows = min(MAX_BLOCK_ROWS, rows)
    chunk_rows = CHUNK_ROWS if block_rows % CHUNK_ROWS == 0 else SUBLANE
    n_tiles = pl.cdiv(rows, block_rows)
    n_full_tiles = rows // block_rows            # >= 1 by construction

    n_outer = 2 if n_tiles >= 2 else 1           # cdiv-based split: shard whenever possible
    n_inner = pl.cdiv(n_tiles, n_outer)
    n_grid_tiles = n_outer * n_inner
    any_partial = n_grid_tiles * block_rows != rows

    last_block = n_tiles - 1
    if n_grid_tiles > n_tiles:
        # Odd tile count: clamp the padded tile onto the last real block so the
        # DMA stays in bounds; the kernel masks its contribution to zero.
        def block_idx(o, i):
            return (jnp.minimum(o * n_inner + i, last_block), 0)
    else:
        def block_idx(o, i):
            return (o * n_inner + i, 0)

    kernel = functools.partial(
        _soft_focal_kernel, eps=float(eps), n_inner=n_inner,
        block_rows=block_rows, chunk_rows=chunk_rows, total_rows=rows,
        n_full_tiles=n_full_tiles, any_partial=any_partial)

    part_shape = jax.ShapeDtypeStruct((n_outer, SUBLANE, LANE), jnp.float32)
    in_bytes = (pred2.size * pred2.dtype.itemsize
                + gt2.size * gt2.dtype.itemsize)
    cost = pl.CostEstimate(flops=22 * total, transcendentals=total,
                           bytes_accessed=in_bytes)

    def run(outer_sem):
        return pl.pallas_call(
            kernel,
            out_shape=(part_shape, part_shape),
            grid_spec=pltpu.PrefetchScalarGridSpec(
                num_scalar_prefetch=0,
                grid=(n_outer, n_inner),
                in_specs=[
                    pl.BlockSpec((block_rows, LANE), block_idx),
                    pl.BlockSpec((block_rows, LANE), block_idx),
                ],
                out_specs=[
                    pl.BlockSpec((1, SUBLANE, LANE), lambda o, i: (o, 0, 0)),
                    pl.BlockSpec((1, SUBLANE, LANE), lambda o, i: (o, 0, 0)),
                ],
            ),
            compiler_params=pltpu.CompilerParams(
                dimension_semantics=(outer_sem, pltpu.ARBITRARY)),
            cost_estimate=cost,
        )(pred2, gt2)

    outer_sem = _outer_semantics() if n_outer == 2 else pltpu.PARALLEL
    if outer_sem is pltpu.CORE_PARALLEL:
        try:
            loss_part, cnt_part = run(pltpu.CORE_PARALLEL)
        except Exception:   # safe fallback if core-parallel lowering is rejected
            loss_part, cnt_part = run(pltpu.PARALLEL)
    else:
        loss_part, cnt_part = run(outer_sem)

    combined_sum = jnp.sum(loss_part)   # pos_loss + neg_loss
    npos = jnp.sum(cnt_part)

    # if num_pos == 0: loss = -neg_loss else -(pos_loss + neg_loss) / num_pos
    # (pos_loss == 0 whenever num_pos == 0, so the combined sum covers both.)
    return jnp.where(npos == 0.0, -combined_sum,
                     -combined_sum / jnp.maximum(npos, 1.0))


def _reference_loss(out, target, eps=0.2):
    pred = jnp.clip(out.astype(jnp.float32), 0.0001, 0.999)
    gt = target.astype(jnp.float32)
    mask = (gt >= 0).astype(jnp.float32) * (gt <= 1).astype(jnp.float32)
    pos_inds = (gt >= 1 - eps).astype(jnp.float32) * mask
    neg_inds = (gt < 1 - eps).astype(jnp.float32) * mask
    neg_weights = jnp.power(1 - gt, 4)
    pos_loss = jnp.sum(jnp.log(pred) * jnp.power(1 - pred, 2) * pos_inds)
    neg_loss = jnp.sum(jnp.log(1 - pred) * jnp.power(pred, 2) * neg_weights * neg_inds)
    num_pos = jnp.sum(pos_inds)
    return jnp.where(num_pos == 0, -neg_loss, -(pos_loss + neg_loss) / num_pos)


if __name__ == "__main__":
    eps = 0.2  # module __init__ only stores eps
    key = jax.random.PRNGKey(0)

    def make_case(k, shape):
        k_out, k_gt = jax.random.split(k)
        pred = jax.nn.sigmoid(jax.random.normal(k_out, shape, dtype=jnp.float32))
        tgt = jax.random.uniform(k_gt, shape, dtype=jnp.float32)
        tgt = jnp.where(tgt > 0.95, 1.0, tgt * 0.8)   # heatmap in [0,1] with peaks at 1
        return pred, tgt

    k1, k2 = jax.random.split(key)

    # Primary small case (NCHW heatmap, as in the PyTorch module).
    out1, tgt1 = make_case(k1, (2, 4, 16, 16))
    loss1 = jax.block_until_ready(smooth_keypoint_focal_loss(out1, tgt1, eps=eps))
    ref1 = _reference_loss(out1, tgt1, eps=eps)
    assert jnp.allclose(loss1, ref1, rtol=1e-5, atol=1e-5), (loss1, ref1)

    # Larger case exercising the 2-way outer split, the masked partial tile and
    # the padded-tile clamp (3 data tiles -> 2x2 grid).
    out2, tgt2 = make_case(k2, (2, 33, 128, 128))
    loss2 = jax.block_until_ready(smooth_keypoint_focal_loss(out2, tgt2, eps=eps))
    ref2 = _reference_loss(out2, tgt2, eps=eps)
    assert jnp.allclose(loss2, ref2, rtol=1e-4, atol=1e-5), (loss2, ref2)

    print("KERNEL_OK")
</pallas_src>

<mosaic_0001>
module attributes {stable_mosaic.version = 11 : i64} {
  func.func @_soft_focal_kernel(%arg0: i32, %arg1: i32, %arg2: memref<16x128xf32, #tpu.memory_space<vmem>>, %arg3: memref<16x128xf32, #tpu.memory_space<vmem>>, %arg4: memref<1x8x128xf32, #tpu.memory_space<vmem>>, %arg5: memref<1x8x128xf32, #tpu.memory_space<vmem>>) attributes {dimension_semantics = [#tpu.dimension_semantics<parallel>, #tpu.dimension_semantics<arbitrary>], iteration_bounds = array<i64: 1, 1>, scalar_prefetch = 0 : i64, scratch_operands = 0 : i64, tpu.core_type = #tpu.core_type<tc>, window_params = [{transform_indices = @transform_0, window_bounds = array<i64: 16, 128>}, {transform_indices = @transform_1, window_bounds = array<i64: 16, 128>}, {transform_indices = @transform_2, window_bounds = array<i64: 1, 8, 128>}, {transform_indices = @transform_3, window_bounds = array<i64: 1, 8, 128>}]} {
    %c0_i32 = arith.constant 0 : i32
    %0 = arith.cmpi eq, %arg1, %c0_i32 : i32
    %1 = arith.extui %0 : i1 to i32
    %c0_i32_0 = arith.constant 0 : i32
    %2 = arith.cmpi ne, %1, %c0_i32_0 : i32
    scf.if %2 {
      %cst_38 = arith.constant 0.000000e+00 : f32
      %88 = vector.broadcast %cst_38 : f32 to vector<1x8x128xf32>
      %c0_39 = arith.constant 0 : index
      %c0_40 = arith.constant 0 : index
      %c0_41 = arith.constant 0 : index
      %89 = vector.load %arg4[%c0_39, %c0_40, %c0_41] : memref<1x8x128xf32, #tpu.memory_space<vmem>>, vector<1x8x128xf32>
      tpu.vector_store %arg4[%c0_39, %c0_40, %c0_41], %88 {strides = array<i32>} : memref<1x8x128xf32, #tpu.memory_space<vmem>>, vector<1x8x128xf32>,
      %cst_42 = arith.constant 0.000000e+00 : f32
      %90 = vector.broadcast %cst_42 : f32 to vector<1x8x128xf32>
      %c0_43 = arith.constant 0 : index
      %c0_44 = arith.constant 0 : index
      %c0_45 = arith.constant 0 : index
      %91 = vector.load %arg5[%c0_43, %c0_44, %c0_45] : memref<1x8x128xf32, #tpu.memory_space<vmem>>, vector<1x8x128xf32>
      tpu.vector_store %arg5[%c0_43, %c0_44, %c0_45], %90 {strides = array<i32>} : memref<1x8x128xf32, #tpu.memory_space<vmem>>, vector<1x8x128xf32>,
    } else {
    }
    %cst = arith.constant 0.000000e+00 : f32
    %3 = vector.broadcast %cst : f32 to vector<8x128xf32>
    %c0_i32_1 = arith.constant 0 : i32
    %c8_i32 = arith.constant 8 : i32
    %4 = arith.muli %c0_i32_1, %c8_i32 : i32
    %5 = tpu.assume_multiple %4, 8 : i32
    %6 = arith.index_cast %5 : i32 to index
    %c0 = arith.constant 0 : index
    %7 = vector.load %arg2[%6, %c0] : memref<16x128xf32, #tpu.memory_space<vmem>>, vector<8x128xf32>
    %8 = arith.index_cast %5 : i32 to index
    %c0_2 = arith.constant 0 : index
    %9 = vector.load %arg3[%8, %c0_2] : memref<16x128xf32, #tpu.memory_space<vmem>>, vector<8x128xf32>
    %cst_3 = arith.constant 9.99999974E-5 : f32
    %cst_4 = arith.constant 9.990000e-01 : f32
    %10 = vector.broadcast %cst_3 : f32 to vector<8x128xf32>
    %11 = arith.maximumf %10, %7 : vector<8x128xf32>
    %12 = vector.broadcast %cst_4 : f32 to vector<8x128xf32>
    %13 = arith.minimumf %12, %11 : vector<8x128xf32>
    %cst_5 = arith.constant 0.000000e+00 : f32
    %14 = vector.broadcast %cst_5 : f32 to vector<8x128xf32>
    %15 = arith.cmpf oge, %9, %14 : vector<8x128xf32>
    %cst_6 = arith.constant 1.000000e+00 : f32
    %16 = vector.broadcast %cst_6 : f32 to vector<8x128xf32>
    %17 = arith.cmpf ole, %9, %16 : vector<8x128xf32>
    %18 = arith.andi %15, %17 : vector<8x128xi1>
    %cst_7 = arith.constant 8.000000e-01 : f32
    %19 = vector.broadcast %cst_7 : f32 to vector<8x128xf32>
    %20 = arith.cmpf oge, %9, %19 : vector<8x128xf32>
    %21 = arith.andi %20, %18 : vector<8x128xi1>
    %cst_8 = arith.constant 1.000000e+00 : f32
    %22 = vector.broadcast %cst_8 : f32 to vector<8x128xf32>
    %23 = arith.subf %22, %13 : vector<8x128xf32>
    %24 = arith.mulf %23, %23 : vector<8x128xf32>
    %25 = arith.mulf %13, %13 : vector<8x128xf32>
    %cst_9 = arith.constant 1.000000e+00 : f32
    %26 = vector.broadcast %cst_9 : f32 to vector<8x128xf32>
    %27 = arith.subf %26, %9 : vector<8x128xf32>
    %28 = arith.mulf %27, %27 : vector<8x128xf32>
    %29 = arith.mulf %28, %28 : vector<8x128xf32>
    %30 = arith.mulf %25, %29 : vector<8x128xf32>
    %31 = arith.select %21, %13, %23 : vector<8x128xi1>, vector<8x128xf32>
    %32 = arith.select %21, %24, %30 : vector<8x128xi1>, vector<8x128xf32>
    %33 = math.log %31 : vector<8x128xf32>
    %34 = arith.mulf %33, %32 : vector<8x128xf32>
    %cst_10 = arith.constant 0.000000e+00 : f32
    %35 = vector.broadcast %cst_10 : f32 to vector<8x128xf32>
    %36 = arith.select %18, %34, %35 : vector<8x128xi1>, vector<8x128xf32>
    %cst_11 = arith.constant 1.000000e+00 : f32
    %cst_12 = arith.constant 0.000000e+00 : f32
    %37 = vector.broadcast %cst_11 : f32 to vector<8x128xf32>
    %38 = vector.broadcast %cst_12 : f32 to vector<8x128xf32>
    %39 = arith.select %21, %37, %38 : vector<8x128xi1>, vector<8x128xf32>
    %40 = arith.addf %3, %36 : vector<8x128xf32>
    %41 = arith.addf %3, %39 : vector<8x128xf32>
    %c1_i32 = arith.constant 1 : i32
    %c8_i32_13 = arith.constant 8 : i32
    %42 = arith.muli %c1_i32, %c8_i32_13 : i32
    %43 = tpu.assume_multiple %42, 8 : i32
    %44 = arith.index_cast %43 : i32 to index
    %c0_14 = arith.constant 0 : index
    %45 = vector.load %arg2[%44, %c0_14] : memref<16x128xf32, #tpu.memory_space<vmem>>, vector<8x128xf32>
    %46 = arith.index_cast %43 : i32 to index
    %c0_15 = arith.constant 0 : index
    %47 = vector.load %arg3[%46, %c0_15] : memref<16x128xf32, #tpu.memory_space<vmem>>, vector<8x128xf32>
    %cst_16 = arith.constant 9.99999974E-5 : f32
    %cst_17 = arith.constant 9.990000e-01 : f32
    %48 = vector.broadcast %cst_16 : f32 to vector<8x128xf32>
    %49 = arith.maximumf %48, %45 : vector<8x128xf32>
    %50 = vector.broadcast %cst_17 : f32 to vector<8x128xf32>
    %51 = arith.minimumf %50, %49 : vector<8x128xf32>
    %cst_18 = arith.constant 0.000000e+00 : f32
    %52 = vector.broadcast %cst_18 : f32 to vector<8x128xf32>
    %53 = arith.cmpf oge, %47, %52 : vector<8x128xf32>
    %cst_19 = arith.constant 1.000000e+00 : f32
    %54 = vector.broadcast %cst_19 : f32 to vector<8x128xf32>
    %55 = arith.cmpf ole, %47, %54 : vector<8x128xf32>
    %56 = arith.andi %53, %55 : vector<8x128xi1>
    %cst_20 = arith.constant 8.000000e-01 : f32
    %57 = vector.broadcast %cst_20 : f32 to vector<8x128xf32>
    %58 = arith.cmpf oge, %47, %57 : vector<8x128xf32>
    %59 = arith.andi %58, %56 : vector<8x128xi1>
    %cst_21 = arith.constant 1.000000e+00 : f32
    %60 = vector.broadcast %cst_21 : f32 to vector<8x128xf32>
    %61 = arith.subf %60, %51 : vector<8x128xf32>
    %62 = arith.mulf %61, %61 : vector<8x128xf32>
    %63 = arith.mulf %51, %51 : vector<8x128xf32>
    %cst_22 = arith.constant 1.000000e+00 : f32
    %64 = vector.broadcast %cst_22 : f32 to vector<8x128xf32>
    %65 = arith.subf %64, %47 : vector<8x128xf32>
    %66 = arith.mulf %65, %65 : vector<8x128xf32>
    %67 = arith.mulf %66, %66 : vector<8x128xf32>
    %68 = arith.mulf %63, %67 : vector<8x128xf32>
    %69 = arith.select %59, %51, %61 : vector<8x128xi1>, vector<8x128xf32>
    %70 = arith.select %59, %62, %68 : vector<8x128xi1>, vector<8x128xf32>
    %71 = math.log %69 : vector<8x128xf32>
    %72 = arith.mulf %71, %70 : vector<8x128xf32>
    %cst_23 = arith.constant 0.000000e+00 : f32
    %73 = vector.broadcast %cst_23 : f32 to vector<8x128xf32>
    %74 = arith.select %56, %72, %73 : vector<8x128xi1>, vector<8x128xf32>
    %cst_24 = arith.constant 1.000000e+00 : f32
    %cst_25 = arith.constant 0.000000e+00 : f32
    %75 = vector.broadcast %cst_24 : f32 to vector<8x128xf32>
    %76 = vector.broadcast %cst_25 : f32 to vector<8x128xf32>
    %77 = arith.select %59, %75, %76 : vector<8x128xi1>, vector<8x128xf32>
    %78 = arith.addf %40, %74 : vector<8x128xf32>
    %79 = arith.addf %41, %77 : vector<8x128xf32>
    %c2_i32 = arith.constant 2 : i32
    %c0_26 = arith.constant 0 : index
    %c0_27 = arith.constant 0 : index
    %c0_28 = arith.constant 0 : index
    %80 = vector.load %arg4[%c0_26, %c0_27, %c0_28] : memref<1x8x128xf32, #tpu.memory_space<vmem>>, vector<1x8x128xf32>
    %81 = vector.shape_cast %78 : vector<8x128xf32> to vector<1x8x128xf32>
    %82 = arith.addf %80, %81 : vector<1x8x128xf32>
    %c0_29 = arith.constant 0 : index
    %c0_30 = arith.constant 0 : index
    %c0_31 = arith.constant 0 : index
    %83 = vector.load %arg4[%c0_29, %c0_30, %c0_31] : memref<1x8x128xf32, #tpu.memory_space<vmem>>, vector<1x8x128xf32>
    tpu.vector_store %arg4[%c0_29, %c0_30, %c0_31], %82 {strides = array<i32>} : memref<1x8x128xf32, #tpu.memory_space<vmem>>, vector<1x8x128xf32>,
    %c0_32 = arith.constant 0 : index
    %c0_33 = arith.constant 0 : index
    %c0_34 = arith.constant 0 : index
    %84 = vector.load %arg5[%c0_32, %c0_33, %c0_34] : memref<1x8x128xf32, #tpu.memory_space<vmem>>, vector<1x8x128xf32>
    %85 = vector.shape_cast %79 : vector<8x128xf32> to vector<1x8x128xf32>
    %86 = arith.addf %84, %85 : vector<1x8x128xf32>
    %c0_35 = arith.constant 0 : index
    %c0_36 = arith.constant 0 : index
    %c0_37 = arith.constant 0 : index
    %87 = vector.load %arg5[%c0_35, %c0_36, %c0_37] : memref<1x8x128xf32, #tpu.memory_space<vmem>>, vector<1x8x128xf32>
    tpu.vector_store %arg5[%c0_35, %c0_36, %c0_37], %86 {strides = array<i32>} : memref<1x8x128xf32, #tpu.memory_space<vmem>>, vector<1x8x128xf32>,
    return
  }
  func.func @transform_0(%arg0: i32, %arg1: i32) -> (i32, i32) {
    %c1_i32 = arith.constant 1 : i32
    %0 = arith.muli %arg0, %c1_i32 : i32
    %1 = arith.addi %0, %arg1 : i32
    %c0_i32 = arith.constant 0 : i32
    %c0_i32_0 = arith.constant 0 : i32
    return %1, %c0_i32 : i32, i32
  }
  func.func @transform_1(%arg0: i32, %arg1: i32) -> (i32, i32) {
    %c1_i32 = arith.constant 1 : i32
    %0 = arith.muli %arg0, %c1_i32 : i32
    %1 = arith.addi %0, %arg1 : i32
    %c0_i32 = arith.constant 0 : i32
    %c0_i32_0 = arith.constant 0 : i32
    return %1, %c0_i32 : i32, i32
  }
  func.func @transform_2(%arg0: i32, %arg1: i32) -> (i32, i32, i32) {
    %c0_i32 = arith.constant 0 : i32
    %c0_i32_0 = arith.constant 0 : i32
    %c0_i32_1 = arith.constant 0 : i32
    return %arg0, %c0_i32, %c0_i32_0 : i32, i32, i32
  }
  func.func @transform_3(%arg0: i32, %arg1: i32) -> (i32, i32, i32) {
    %c0_i32 = arith.constant 0 : i32
    %c0_i32_0 = arith.constant 0 : i32
    %c0_i32_1 = arith.constant 0 : i32
    return %arg0, %c0_i32, %c0_i32_0 : i32, i32, i32
  }
}

</mosaic_0001>

<bundles_post_ra>
// kernel: tpu_custom_call.1
= control target key start
LH: loop header
LB: loop body
LE: loop exit
PB: predicated region body
PF: predicated region fallthrough
CT: control target
= control target key end

     0   :  { %9 = vsyncpa [#allocation3], 0  ;;  %s323_s0 = inlined_call_operand.hbm [shape: f32[16,128], index: 0, kind: input, shape index: {}]   ;;  %s324_s1 = inlined_call_operand.hbm [shape: f32[16,128], index: 1, kind: input, shape index: {}]   ;;  %s325_s2 = inlined_call_operand.hbm [shape: f32[1,8,128], index: 2, kind: output, shape index: {0}]   ;;  %s326_s3 = inlined_call_operand.hbm [shape: f32[1,8,128], index: 3, kind: output, shape index: {1}]  }
   0x1   :  { %10 = vsyncpa [#allocation6], 0 }
   0x2   :  { %11 = vsyncpa [#allocation4], 0 }
   0x3   :  { %12 = vsyncpa [#allocation9], 0  ;;  %s248_s12 = smov [#allocation2]  }
   0x4   :  { %s22_s13 = sshll.u32 %s248_s12, 4  ;;  %s23_s13 = int_to_ptr.vmem [resolvable:$true] %s22_s13 }
   0x5   :  { %s168_s14 = scalar_lea.vmem %s23_s13, 256  ;;  %p173_p1 = scmp.lt.s32.totalorder %s23_s13, %s23_s13 }
   0x6   :  { %p169_p0 = scmp.ne.s32.totalorder %s23_s13, %s168_s14  ;;  %p174_p2 = scmp.lt.s32.totalorder %s168_s14, %s168_s14 }
   0x8   :  { %p175_p3 = por %p174_p2, %p173_p1 }
   0xa   :  { %p176_p4 = pnand %p175_p3, %p169_p0 }
   0xc   :  { %179 = shalt.err (!%p176_p4)
}
   0xd   :  { %s249_s15 = smov 128   ;;  %s250_s16 = smov 8  }
   0xe   :  { %28 = dma.hbm_to_vmem [thread:$0]  %s323_s0, 256, %s23_s13, [#allocation3], %s249_s15, %s249_s15, %s250_s16  }
   0xf   :  { %s251_s19 = smov [#allocation5]  }
  0x10   :  { %s38_s20 = sshll.u32 %s251_s19, 4  ;;  %s39_s20 = int_to_ptr.vmem [resolvable:$true] %s38_s20 }
  0x11   :  { %s188_s21 = scalar_lea.vmem %s39_s20, 256  ;;  %p193_p6 = scmp.lt.s32.totalorder %s39_s20, %s39_s20 }
  0x12   :  { %p189_p5 = scmp.ne.s32.totalorder %s39_s20, %s188_s21  ;;  %p194_p7 = scmp.lt.s32.totalorder %s188_s21, %s188_s21 }
  0x14   :  { %p195_p8 = por %p194_p7, %p193_p6 }
  0x16   :  { %p196_p9 = pnand %p195_p8, %p189_p5 }
  0x18   :  { %199 = shalt.err (!%p196_p9)
}
  0x19   :  { %44 = dma.hbm_to_vmem [thread:$0]  %s324_s1, 256, %s39_s20, [#allocation6], %s249_s15, %s249_s15, %s250_s16  }
  0x1a   :  { %240 = dma.done.wait [#allocation3], 256  }
  0x1b   :  { %241 = vsyncadd [#allocation3], 4294967040 }
  0x1c   :  { %242 = dma.done.wait [#allocation6], 256  }
  0x1d   :  { %243 = vsyncadd [#allocation6], 4294967040  ;;  %v61_v0 = vld [vmem:[#allocation2] sm:$0xff]  ;;  %v62_v1 = vld [vmem:[#allocation5] sm:$0xff]  ;;  %v252_v15 = vmov 0.0   ;;  %s253_s0 = smov [#allocation8]  }
  0x1e   :  { %v87_v2 = vld [vmem:[#allocation2 + $0x8] sm:$0xff]  ;;  %v63_v3 = vmax.f32 %v61_v0, 0.0001  ;;  %vm65_vm0 = vcmp.ge.f32.partialorder %v62_v1, 0.0  ;;  %vm66_vm1 = vcmp.le.f32.partialorder %v62_v1, 1.0  ;;  %v89_v5 = vld [vmem:[#allocation5 + $0x8] sm:$0xff] }
  0x1f   :  { %vm68_vm2 = vcmp.ge.f32.partialorder %v62_v1, 0.8  ;;  %vm281_vm3 = vmand %vm65_vm0, %vm66_vm1  ;;  %v90_v6 = vmax.f32 %v87_v2, 0.0001  ;;  %vm92_vm5 = vcmp.ge.f32.partialorder %v89_v5, 0.0  ;;  %vm93_vm6 = vcmp.le.f32.partialorder %v89_v5, 1.0 }
  0x20   :  { %v64_v7 = vmin.f32 %v63_v3, 0.999  ;;  %vm287_vm4 = vmand %vm68_vm2, %vm281_vm3  ;;  %vm95_vm7 = vcmp.ge.f32.partialorder %v89_v5, 0.8  ;;  %v73_v12 = vsub.f32 1.0, %v62_v1  ;;  %v100_v18 = vsub.f32 1.0, %v89_v5 }
  0x21   :  { %v91_v9 = vmin.f32 %v90_v6, 0.999  ;;  %vm291_vm8 = vmand %vm92_vm5, %vm93_vm6  ;;  %v83_v16 = vsel %vm287_vm4, 1.0, %v252_v15  ;;  %s135_s1 = sshll.u32 %s253_s0, 4  ;;  %s136_s1 = int_to_ptr.vmem [resolvable:$true] %s135_s1 }
  0x22   :  { %v70_v11 = vsub.f32 1.0, %v64_v7  ;;  %vm297_vm9 = vmand %vm95_vm7, %vm291_vm8  ;;  %v74_v20 = vmul.f32 %v73_v12, %v73_v12  ;;  %v101_v23 = vmul.f32 %v100_v18, %v100_v18  ;;  %v72_v24 = vmul.f32 %v64_v7, %v64_v7  ;;  %s200_s24 = scalar_lea.vmem %s136_s1, 128  ;;  %p205_p11 = scmp.lt.s32.totalorder %s136_s1, %s136_s1 }
  0x23   :  { %v97_v14 = vsub.f32 1.0, %v91_v9  ;;  %v110_v19 = vsel %vm297_vm9, 1.0, %v252_v15  ;;  %p201_p10 = scmp.ne.s32.totalorder %s136_s1, %s200_s24  ;;  %p206_p12 = scmp.lt.s32.totalorder %s200_s24, %s200_s24 }
  0x24   :  { %v77_v17 = vsel %vm287_vm4, %v64_v7, %v70_v11  ;;  %v112_v22 = vadd.f32 %v110_v19, %v83_v16  ;;  %v75_v25 = vmul.f32 %v74_v20, %v74_v20 }
  0x25   :  { %156 = vlog2.f32 %v77_v17  ;;  %v104_v21 = vsel %vm297_vm9, %v91_v9, %v97_v14  ;;  %p207_p13 = por %p206_p12, %p205_p11 }
  0x26   :  { %158 = vlog2.f32 %v104_v21  ;;  %118 = vst [vmem:[#allocation8] sm:$0xff] %v112_v22 }
  0x27   :  { %p208_p0 = pnand %p207_p13, %p201_p10 }
  0x29   :  { %211 = shalt.err (!%p208_p0)
}
  0x2a   :  { %138 = dma.vmem_to_hbm [thread:$0]  %s136_s1, 128, %s326_s3, [#allocation9]   ;;  %v99_v26 = vmul.f32 %v91_v9, %v91_v9  ;;  %v102_v27 = vmul.f32 %v101_v23, %v101_v23  ;;  %v71_v28 = vmul.f32 %v70_v11, %v70_v11  ;;  %v76_v29 = vmul.f32 %v75_v25, %v72_v24 }
  0x2b   :  { %v98_v30 = vmul.f32 %v97_v14, %v97_v14  ;;  %s254_s3 = smov [#allocation7]  }
  0x2c   :  { %v103_v31 = vmul.f32 %v102_v27, %v99_v26  ;;  %v78_v33 = vsel %vm287_vm4, %v71_v28, %v76_v29  ;;  %s125_s27 = sshll.u32 %s254_s3, 4  ;;  %s126_s27 = int_to_ptr.vmem [resolvable:$true] %s125_s27 }
  0x2d   :  { %s220_s28 = scalar_lea.vmem %s126_s27, 128  ;;  %p225_p2 = scmp.lt.s32.totalorder %s126_s27, %s126_s27 }
  0x2e   :  { %v105_v36 = vsel %vm297_vm9, %v98_v30, %v103_v31  ;;  %p221_p1 = scmp.ne.s32.totalorder %s126_s27, %s220_s28  ;;  %p226_p3 = scmp.lt.s32.totalorder %s220_s28, %s220_s28 }
  0x30   :  { %p227_p4 = por %p226_p3, %p225_p2 }
  0x32   :  { %v157_v32 = vpop.eup %156  ;;  %p228_p5 = pnand %p227_p4, %p221_p1 }
  0x33   :  { %v80_v34 = vmul.f32 0.6931472, %v157_v32  ;;  %v159_v35 = vpop.eup %158 }
  0x34   :  { %v107_v38 = vmul.f32 0.6931472, %v159_v35 }
  0x35   :  { %v81_v37 = vmul.f32 %v80_v34, %v78_v33 }
  0x36   :  { %v108_v40 = vmul.f32 %v107_v38, %v105_v36 }
  0x37   :  { %v82_v39 = vsel %vm281_vm3, %v81_v37, 0.0 }
  0x38   :  { %v109_v41 = vsel %vm291_vm8, %v108_v40, 0.0 }
  0x39   :  { %v111_v42 = vadd.f32 %v109_v41, %v82_v39 }
  0x3b   :  { %115 = vst [vmem:[#allocation7] sm:$0xff] %v111_v42 }
  0x3c   :  { %231 = shalt.err (!%p228_p5)
}
  0x3d   :  { %128 = dma.vmem_to_hbm [thread:$0]  %s126_s27, 128, %s325_s2, [#allocation4]  }
  0x3e   :  { %244 = dma.done.wait [#allocation4], 128  }
  0x3f   :  { %245 = vsyncadd [#allocation4], 4294967168 }
  0x40   :  { %246 = dma.done.wait [#allocation9], 128  }
  0x41   :  { %247 = vsyncadd [#allocation9], 4294967168 }
  0x42   :  { %145 = vsyncpa [#allocation3], 1 }
  0x43   :  { %146 = vsyncpa [#allocation6], 1 }
  0x44   :  { %147 = vsyncpa [#allocation4], 1 }
  0x45   :  { %148 = vsyncpa [#allocation9], 1 }

</bundles_post_ra>
